<compile_context>
chip_gen: v5e
topology: v5e:2x2
jax: 0.10.0
libtpu: 0.0.40
codegen_flags: <defaults>
</compile_context>

<pallas_src>
import functools

import jax
import jax.numpy as jnp
from jax.experimental import pallas as pl
from jax.experimental.pallas import tpu as pltpu


LANE = 128


def _round_up(x, m):
    return ((x + m - 1) // m) * m


def _cdiv(a, b):
    return -(-a // b)


def _layernorm_padded(x, gamma, beta, true_dim, eps=1e-5):
    """PyTorch nn.LayerNorm (biased variance, eps inside rsqrt) over the TRUE feature
    dim of a lane-padded activation whose padded columns are exactly 0.

    Single pass: padded columns contribute 0 to both sum(x) and sum(x*x), so
    mean and E[x^2] over the true dim are just the sums divided by true_dim."""
    inv_d = 1.0 / float(true_dim)
    s1 = jnp.sum(x, axis=-1, keepdims=True)
    s2 = jnp.sum(x * x, axis=-1, keepdims=True)
    mean = s1 * inv_d
    var = s2 * inv_d - mean * mean
    # gamma/beta are zero in padded lanes, so padded lanes stay exactly 0.
    return (x - mean) * jax.lax.rsqrt(var + eps) * gamma + beta


def _critic_kernel(xa_ref, w_in_ref, p_in_ref, w2_ref, p2_ref, wq_ref, out_ref,
                   *, d1, d2, d1p):
    # xa = [state | action], (TB, in_dims + n_actions)
    xa = xa_ref[...]

    # Fused first stage: [state|action] @ [[w1,0],[0,w_av]] + [b1|b_av]
    #   columns [0, d1p)   = fc1(state)        (lane-padded, padded cols exactly 0)
    #   columns [d1p, end) = action_value(a)   (lane-padded, padded cols exactly 0)
    w_in = w_in_ref[...]
    if w_in.dtype != xa.dtype:                       # bf16-weight path (f32 accumulate)
        xa = xa.astype(w_in.dtype)
    h_all = jnp.dot(xa, w_in, preferred_element_type=jnp.float32) + p_in_ref[0:1, :]
    h1 = h_all[:, :d1p]          # fc1(state), 128-aligned slice
    av = h_all[:, d1p:]          # action_value(action), 128-aligned slice

    # LayerNorm(fc1_dims) -> ReLU
    h1 = _layernorm_padded(h1, p_in_ref[1:2, :d1p], p_in_ref[2:3, :d1p], d1)
    h1 = jnp.maximum(h1, 0.0)

    # fc2 -> LayerNorm(fc2_dims)   (no ReLU before the add, per the PyTorch forward)
    w2 = w2_ref[...]
    if w2.dtype != h1.dtype:
        h1 = h1.astype(w2.dtype)
    sv = jnp.dot(h1, w2, preferred_element_type=jnp.float32) + p2_ref[0:1, :]
    sv = _layernorm_padded(sv, p2_ref[1:2, :], p2_ref[2:3, :], d2)

    # q(relu(state_value + action_value)); only column 0 of the padded projection is
    # real — store just that column (narrow (TB, 1) output, no padded HBM writeback).
    sav = jnp.maximum(sv + av, 0.0)
    wq = wq_ref[...]
    if wq.dtype != sav.dtype:
        sav = sav.astype(wq.dtype)
    q_full = jnp.dot(sav, wq, preferred_element_type=jnp.float32)
    out_ref[...] = q_full[:, 0:1] + p2_ref[3:4, 0:1]


def init_critic_params(key, input_dims, fc1_dims, fc2_dims, n_actions):
    """Mirror init_layer_uniformly_:
       fc1/fc2/action_value ~ U(-1/sqrt(out_dim), 1/sqrt(out_dim))
           (PyTorch weight.size()[0] == out_features)
       q ~ U(-0.003, 0.003); LayerNorm gamma = 1, beta = 0."""
    ks = jax.random.split(key, 8)
    v1 = fc1_dims ** -0.5
    v2 = fc2_dims ** -0.5

    def u(k, shape, lo, hi):
        return jax.random.uniform(k, shape, jnp.float32, lo, hi)

    return {
        # weights stored as [in, out] (transpose of PyTorch's [out, in])
        "w1": u(ks[0], (input_dims, fc1_dims), -v1, v1),
        "b1": u(ks[1], (1, fc1_dims), -v1, v1),
        "g1": jnp.ones((1, fc1_dims), jnp.float32),
        "be1": jnp.zeros((1, fc1_dims), jnp.float32),
        "w2": u(ks[2], (fc1_dims, fc2_dims), -v2, v2),
        "b2": u(ks[3], (1, fc2_dims), -v2, v2),
        "g2": jnp.ones((1, fc2_dims), jnp.float32),
        "be2": jnp.zeros((1, fc2_dims), jnp.float32),
        "w_av": u(ks[4], (n_actions, fc2_dims), -v2, v2),
        "b_av": u(ks[5], (1, fc2_dims), -v2, v2),
        "w_q": u(ks[6], (fc2_dims, 1), -0.003, 0.003),
        "b_q": u(ks[7], (1, 1), -0.003, 0.003),
    }


def pack_critic_params(params, lane=LANE, weights_dtype=jnp.float32):
    """Zero-pad feature dims to multiples of `lane`, fuse fc1/action_value into one
    block-diagonal weight, and consolidate all small per-feature vectors so the
    kernel takes 5 resident param refs.

    weights_dtype=jnp.bfloat16 stores the three weight matrices in bf16 (half the
    resident VMEM / param DMA, native MXU rate); biases/LayerNorm params stay f32."""
    in_dims, d1 = params["w1"].shape
    n_actions, d2 = params["w_av"].shape
    d1p = _round_up(d1, lane)
    d2p = _round_up(d2, lane)

    # Block-diagonal first-stage weight: [state | action] @ w_in = [fc1(s) | av(a)]
    w_in = jnp.zeros((in_dims + n_actions, d1p + d2p), jnp.float32)
    w_in = w_in.at[:in_dims, :d1].set(params["w1"])
    w_in = w_in.at[in_dims:, d1p:d1p + d2].set(params["w_av"])

    # p_in rows: [b1 | b_av], [gamma1 | 0], [beta1 | 0]
    p_in = jnp.zeros((3, d1p + d2p), jnp.float32)
    p_in = p_in.at[0, :d1].set(params["b1"][0])
    p_in = p_in.at[0, d1p:d1p + d2].set(params["b_av"][0])
    p_in = p_in.at[1, :d1].set(params["g1"][0])
    p_in = p_in.at[2, :d1].set(params["be1"][0])

    w2 = jnp.zeros((d1p, d2p), jnp.float32).at[:d1, :d2].set(params["w2"])

    # p2 rows: b2, gamma2, beta2, [b_q, 0, 0, ...]
    p2 = jnp.zeros((4, d2p), jnp.float32)
    p2 = p2.at[0, :d2].set(params["b2"][0])
    p2 = p2.at[1, :d2].set(params["g2"][0])
    p2 = p2.at[2, :d2].set(params["be2"][0])
    p2 = p2.at[3, 0].set(params["b_q"][0, 0])

    # q projection padded to 128 lanes for the MXU; only column 0 is real.
    w_q = jnp.zeros((d2p, lane), jnp.float32).at[:d2, 0].set(params["w_q"][:, 0])

    wd = weights_dtype
    return {
        "w_in": w_in.astype(wd),
        "p_in": p_in,
        "w2": w2.astype(wd),
        "p2": p2,
        "w_q": w_q.astype(wd),
        "dims": (int(in_dims), int(n_actions), int(d1), int(d2), int(d1p), int(d2p)),
    }


def critic_forward(state, action, packed, *, tb=1024, min_grid_steps=2):
    """state: [B, input_dims] f32, action: [B, n_actions] f32 -> q: [B, 1] f32."""
    state = state.astype(jnp.float32)
    action = action.astype(jnp.float32)
    in_dims, n_actions, d1, d2, d1p, d2p = packed["dims"]
    B = state.shape[0]
    assert state.shape[1] == in_dims and action.shape[1] == n_actions

    # Single fused input stream (one DMA per grid step instead of two).
    xa = jnp.concatenate([state, action], axis=1)
    in_cols = in_dims + n_actions

    # Adaptive batch tile:
    #  * nb >= min_grid_steps so both v7x TensorCores get work,
    #  * TB = round_up(cdiv(B, nb), 8) keeps batch padding small and TB a multiple of 8,
    #  * TB <= tb (tb itself clamped to a multiple of 8).
    tb = max(8, _round_up(tb, 8))
    nb_target = max(min_grid_steps, _cdiv(B, tb))
    TB = min(tb, _round_up(_cdiv(B, nb_target), 8))
    nb = _cdiv(B, TB)
    Bp = nb * TB
    if Bp != B:
        xa = jnp.pad(xa, ((0, Bp - B), (0, 0)))

    kernel = functools.partial(_critic_kernel, d1=d1, d2=d2, d1p=d1p)

    param_order = ("w_in", "p_in", "w2", "p2", "w_q")
    param_args = tuple(packed[k] for k in param_order)

    def const_spec(arr):  # whole param resident in VMEM across all grid steps
        return pl.BlockSpec(arr.shape, lambda i: (0, 0))

    # VMEM budget derived from the actual working set (params possibly double-buffered
    # by the pipeliner, double-buffered in/out tiles, headroom for intermediates).
    param_bytes = sum(int(p.size) * p.dtype.itemsize for p in param_args)
    io_bytes = 2 * (TB * in_cols * 4 + TB * 1 * 4)
    act_bytes = 4 * TB * (d1p + d2p) * 4
    vmem_limit = int(min(64 << 20,
                         max(8 << 20, 2 * param_bytes + io_bytes + act_bytes + (2 << 20))))

    flops = 2 * Bp * (in_dims * d1 + n_actions * d2 + d1 * d2 + d2)
    bytes_accessed = 4 * Bp * (in_cols + 1) + param_bytes

    out = pl.pallas_call(
        kernel,
        out_shape=jax.ShapeDtypeStruct((Bp, 1), jnp.float32),   # narrow output: 4 B/row
        grid=(nb,),
        in_specs=[pl.BlockSpec((TB, in_cols), lambda i: (i, 0))]
                 + [const_spec(p) for p in param_args],
        out_specs=pl.BlockSpec((TB, 1), lambda i: (i, 0)),
        compiler_params=pltpu.CompilerParams(
            dimension_semantics=("parallel",),   # batch axis; megacore shard on v7x
            vmem_limit_bytes=vmem_limit,
        ),
        cost_estimate=pl.CostEstimate(
            flops=flops,
            transcendentals=2 * Bp,              # two rsqrt per row
            bytes_accessed=bytes_accessed,
        ),
    )(xa, *param_args)

    return out[:B]


def critic_reference(state, action, params):
    """Pure-JAX reference matching the PyTorch CriticNetwork.forward."""
    def ln(x, g, b, eps=1e-5):
        m = jnp.mean(x, -1, keepdims=True)
        v = jnp.mean((x - m) ** 2, -1, keepdims=True)
        return (x - m) * jax.lax.rsqrt(v + eps) * g + b

    h = state @ params["w1"] + params["b1"]
    h = jnp.maximum(ln(h, params["g1"], params["be1"]), 0.0)
    sv = h @ params["w2"] + params["b2"]
    sv = ln(sv, params["g2"], params["be2"])
    av = action @ params["w_av"] + params["b_av"]
    sav = jnp.maximum(sv + av, 0.0)
    return sav @ params["w_q"] + params["b_q"]


if __name__ == "__main__":
    # Small deterministic test; B=10 also exercises the multi-step grid and the
    # batch-padding path (TB=8, nb=2, Bp=16).
    B = 10
    input_dims = 32
    fc1_dims = 64
    fc2_dims = 64
    n_actions = 4

    key = jax.random.PRNGKey(0)
    k_state, k_action, k_params = jax.random.split(key, 3)

    state = jax.random.normal(k_state, (B, input_dims), jnp.float32)
    action = jax.random.uniform(k_action, (B, n_actions), jnp.float32, -1.0, 1.0)

    params = init_critic_params(k_params, input_dims, fc1_dims, fc2_dims, n_actions)
    packed = pack_critic_params(params)        # f32 weights; bf16 optional for large nets

    q = critic_forward(state, action, packed)
    q = jax.block_until_ready(q)

    q_ref = critic_reference(state, action, params)
    assert q.shape == (B, 1)
    assert bool(jnp.all(jnp.isfinite(q)))
    assert bool(jnp.allclose(q, q_ref, rtol=5e-3, atol=1e-5))
    print("KERNEL_OK")
</pallas_src>

<mosaic_0001>
module attributes {stable_mosaic.version = 11 : i64} {
  func.func @_critic_kernel(%arg0: i32, %arg1: memref<8x36xf32, #tpu.memory_space<vmem>>, %arg2: memref<36x256xf32, #tpu.memory_space<vmem>>, %arg3: memref<3x256xf32, #tpu.memory_space<vmem>>, %arg4: memref<128x128xf32, #tpu.memory_space<vmem>>, %arg5: memref<4x128xf32, #tpu.memory_space<vmem>>, %arg6: memref<128x128xf32, #tpu.memory_space<vmem>>, %arg7: memref<8x1xf32, #tpu.memory_space<vmem>>) attributes {dimension_semantics = [#tpu.dimension_semantics<parallel>], iteration_bounds = array<i64: 2>, scalar_prefetch = 0 : i64, scratch_operands = 0 : i64, tpu.core_type = #tpu.core_type<tc>, window_params = [{transform_indices = @transform_0, window_bounds = array<i64: 8, 36>}, {pipeline_mode = #tpu.pipeline_mode<synchronous>, transform_indices = @transform_1, window_bounds = array<i64: 36, 256>}, {pipeline_mode = #tpu.pipeline_mode<synchronous>, transform_indices = @transform_2, window_bounds = array<i64: 3, 256>}, {pipeline_mode = #tpu.pipeline_mode<synchronous>, transform_indices = @transform_3, window_bounds = array<i64: 128, 128>}, {pipeline_mode = #tpu.pipeline_mode<synchronous>, transform_indices = @transform_4, window_bounds = array<i64: 4, 128>}, {pipeline_mode = #tpu.pipeline_mode<synchronous>, transform_indices = @transform_5, window_bounds = array<i64: 128, 128>}, {transform_indices = @transform_6, window_bounds = array<i64: 8, 1>}]} {
    %c0 = arith.constant 0 : index
    %c0_0 = arith.constant 0 : index
    %0 = vector.load %arg1[%c0, %c0_0] : memref<8x36xf32, #tpu.memory_space<vmem>>, vector<8x36xf32>
    %c0_1 = arith.constant 0 : index
    %c0_2 = arith.constant 0 : index
    %1 = vector.load %arg2[%c0_1, %c0_2] : memref<36x256xf32, #tpu.memory_space<vmem>>, vector<36x256xf32>
    %cst = arith.constant dense<0.000000e+00> : vector<8x256xf32>
    %2 = tpu.matmul %0, %1, %cst {dimension_numbers = #tpu.dot_dimension_numbers<[1], [0], [0], [1], [0, 0, 1, 1], [], []>} : vector<8x36xf32>, vector<36x256xf32>, vector<8x256xf32> -> vector<8x256xf32>
    %c0_3 = arith.constant 0 : index
    %c0_4 = arith.constant 0 : index
    %3 = vector.load %arg3[%c0_3, %c0_4] : memref<3x256xf32, #tpu.memory_space<vmem>>, vector<1x256xf32>
    %4 = vector.broadcast %3 : vector<1x256xf32> to vector<8x256xf32>
    %5 = arith.addf %2, %4 : vector<8x256xf32>
    %6 = vector.extract_strided_slice %5 {offsets = [0, 0], sizes = [8, 128], strides = [1, 1]} : vector<8x256xf32> to vector<8x128xf32>
    %7 = vector.extract_strided_slice %5 {offsets = [0, 128], sizes = [8, 128], strides = [1, 1]} : vector<8x256xf32> to vector<8x128xf32>
    %c1 = arith.constant 1 : index
    %c0_5 = arith.constant 0 : index
    %8 = vector.load %arg3[%c1, %c0_5] : memref<3x256xf32, #tpu.memory_space<vmem>>, vector<1x128xf32>
    %c2 = arith.constant 2 : index
    %c0_6 = arith.constant 0 : index
    %9 = vector.load %arg3[%c2, %c0_6] : memref<3x256xf32, #tpu.memory_space<vmem>>, vector<1x128xf32>
    %cst_7 = arith.constant dense<0.000000e+00> : vector<8xf32>
    %10 = vector.multi_reduction <add>, %6, %cst_7 [1] : vector<8x128xf32> to vector<8xf32>
    %11 = vector.shape_cast %10 : vector<8xf32> to vector<8x1xf32>
    %12 = arith.mulf %6, %6 : vector<8x128xf32>
    %cst_8 = arith.constant dense<0.000000e+00> : vector<8xf32>
    %13 = vector.multi_reduction <add>, %12, %cst_8 [1] : vector<8x128xf32> to vector<8xf32>
    %14 = vector.shape_cast %13 : vector<8xf32> to vector<8x1xf32>
    %cst_9 = arith.constant 1.562500e-02 : f32
    %15 = vector.broadcast %cst_9 : f32 to vector<8x1xf32>
    %16 = arith.mulf %11, %15 : vector<8x1xf32>
    %cst_10 = arith.constant 1.562500e-02 : f32
    %17 = vector.broadcast %cst_10 : f32 to vector<8x1xf32>
    %18 = arith.mulf %14, %17 : vector<8x1xf32>
    %19 = arith.mulf %16, %16 : vector<8x1xf32>
    %20 = arith.subf %18, %19 : vector<8x1xf32>
    %21 = vector.broadcast %16 : vector<8x1xf32> to vector<8x128xf32>
    %22 = arith.subf %6, %21 : vector<8x128xf32>
    %cst_11 = arith.constant 9.99999974E-6 : f32
    %23 = vector.broadcast %cst_11 : f32 to vector<8x1xf32>
    %24 = arith.addf %20, %23 : vector<8x1xf32>
    %25 = math.rsqrt %24 : vector<8x1xf32>
    %26 = vector.broadcast %25 : vector<8x1xf32> to vector<8x128xf32>
    %27 = arith.mulf %22, %26 : vector<8x128xf32>
    %28 = vector.broadcast %8 : vector<1x128xf32> to vector<8x128xf32>
    %29 = arith.mulf %27, %28 : vector<8x128xf32>
    %30 = vector.broadcast %9 : vector<1x128xf32> to vector<8x128xf32>
    %31 = arith.addf %29, %30 : vector<8x128xf32>
    %cst_12 = arith.constant 0.000000e+00 : f32
    %32 = vector.broadcast %cst_12 : f32 to vector<8x128xf32>
    %33 = arith.maximumf %31, %32 : vector<8x128xf32>
    %c0_13 = arith.constant 0 : index
    %c0_14 = arith.constant 0 : index
    %34 = vector.load %arg4[%c0_13, %c0_14] : memref<128x128xf32, #tpu.memory_space<vmem>>, vector<128x128xf32>
    %cst_15 = arith.constant dense<0.000000e+00> : vector<8x128xf32>
    %35 = tpu.matmul %33, %34, %cst_15 {dimension_numbers = #tpu.dot_dimension_numbers<[1], [0], [0], [1], [0, 0, 1, 1], [], []>} : vector<8x128xf32>, vector<128x128xf32>, vector<8x128xf32> -> vector<8x128xf32>
    %c0_16 = arith.constant 0 : index
    %c0_17 = arith.constant 0 : index
    %36 = vector.load %arg5[%c0_16, %c0_17] : memref<4x128xf32, #tpu.memory_space<vmem>>, vector<1x128xf32>
    %37 = vector.broadcast %36 : vector<1x128xf32> to vector<8x128xf32>
    %38 = arith.addf %35, %37 : vector<8x128xf32>
    %c1_18 = arith.constant 1 : index
    %c0_19 = arith.constant 0 : index
    %39 = vector.load %arg5[%c1_18, %c0_19] : memref<4x128xf32, #tpu.memory_space<vmem>>, vector<1x128xf32>
    %c2_20 = arith.constant 2 : index
    %c0_21 = arith.constant 0 : index
    %40 = vector.load %arg5[%c2_20, %c0_21] : memref<4x128xf32, #tpu.memory_space<vmem>>, vector<1x128xf32>
    %cst_22 = arith.constant dense<0.000000e+00> : vector<8xf32>
    %41 = vector.multi_reduction <add>, %38, %cst_22 [1] : vector<8x128xf32> to vector<8xf32>
    %42 = vector.shape_cast %41 : vector<8xf32> to vector<8x1xf32>
    %43 = arith.mulf %38, %38 : vector<8x128xf32>
    %cst_23 = arith.constant dense<0.000000e+00> : vector<8xf32>
    %44 = vector.multi_reduction <add>, %43, %cst_23 [1] : vector<8x128xf32> to vector<8xf32>
    %45 = vector.shape_cast %44 : vector<8xf32> to vector<8x1xf32>
    %cst_24 = arith.constant 1.562500e-02 : f32
    %46 = vector.broadcast %cst_24 : f32 to vector<8x1xf32>
    %47 = arith.mulf %42, %46 : vector<8x1xf32>
    %cst_25 = arith.constant 1.562500e-02 : f32
    %48 = vector.broadcast %cst_25 : f32 to vector<8x1xf32>
    %49 = arith.mulf %45, %48 : vector<8x1xf32>
    %50 = arith.mulf %47, %47 : vector<8x1xf32>
    %51 = arith.subf %49, %50 : vector<8x1xf32>
    %52 = vector.broadcast %47 : vector<8x1xf32> to vector<8x128xf32>
    %53 = arith.subf %38, %52 : vector<8x128xf32>
    %cst_26 = arith.constant 9.99999974E-6 : f32
    %54 = vector.broadcast %cst_26 : f32 to vector<8x1xf32>
    %55 = arith.addf %51, %54 : vector<8x1xf32>
    %56 = math.rsqrt %55 : vector<8x1xf32>
    %57 = vector.broadcast %56 : vector<8x1xf32> to vector<8x128xf32>
    %58 = arith.mulf %53, %57 : vector<8x128xf32>
    %59 = vector.broadcast %39 : vector<1x128xf32> to vector<8x128xf32>
    %60 = arith.mulf %58, %59 : vector<8x128xf32>
    %61 = vector.broadcast %40 : vector<1x128xf32> to vector<8x128xf32>
    %62 = arith.addf %60, %61 : vector<8x128xf32>
    %63 = arith.addf %62, %7 : vector<8x128xf32>
    %cst_27 = arith.constant 0.000000e+00 : f32
    %64 = vector.broadcast %cst_27 : f32 to vector<8x128xf32>
    %65 = arith.maximumf %63, %64 : vector<8x128xf32>
    %c0_28 = arith.constant 0 : index
    %c0_29 = arith.constant 0 : index
    %66 = vector.load %arg6[%c0_28, %c0_29] : memref<128x128xf32, #tpu.memory_space<vmem>>, vector<128x128xf32>
    %cst_30 = arith.constant dense<0.000000e+00> : vector<8x128xf32>
    %67 = tpu.matmul %65, %66, %cst_30 {dimension_numbers = #tpu.dot_dimension_numbers<[1], [0], [0], [1], [0, 0, 1, 1], [], []>} : vector<8x128xf32>, vector<128x128xf32>, vector<8x128xf32> -> vector<8x128xf32>
    %68 = vector.extract_strided_slice %67 {offsets = [0, 0], sizes = [8, 1], strides = [1, 1]} : vector<8x128xf32> to vector<8x1xf32>
    %c3 = arith.constant 3 : index
    %c0_31 = arith.constant 0 : index
    %69 = vector.load %arg5[%c3, %c0_31] : memref<4x128xf32, #tpu.memory_space<vmem>>, vector<1x1xf32>
    %70 = vector.broadcast %69 : vector<1x1xf32> to vector<8x1xf32>
    %71 = arith.addf %68, %70 : vector<8x1xf32>
    %c0_32 = arith.constant 0 : index
    %c0_33 = arith.constant 0 : index
    %72 = vector.load %arg7[%c0_32, %c0_33] : memref<8x1xf32, #tpu.memory_space<vmem>>, vector<8x1xf32>
    tpu.vector_store %arg7[%c0_32, %c0_33], %71 {strides = array<i32>} : memref<8x1xf32, #tpu.memory_space<vmem>>, vector<8x1xf32>,
    return
  }
  func.func @transform_0(%arg0: i32) -> (i32, i32) {
    %c0_i32 = arith.constant 0 : i32
    %c0_i32_0 = arith.constant 0 : i32
    return %arg0, %c0_i32 : i32, i32
  }
  func.func @transform_1(%arg0: i32) -> (i32, i32) {
    %c0_i32 = arith.constant 0 : i32
    %c0_i32_0 = arith.constant 0 : i32
    %c0_i32_1 = arith.constant 0 : i32
    return %c0_i32, %c0_i32_0 : i32, i32
  }
  func.func @transform_2(%arg0: i32) -> (i32, i32) {
    %c0_i32 = arith.constant 0 : i32
    %c0_i32_0 = arith.constant 0 : i32
    %c0_i32_1 = arith.constant 0 : i32
    return %c0_i32, %c0_i32_0 : i32, i32
  }
  func.func @transform_3(%arg0: i32) -> (i32, i32) {
    %c0_i32 = arith.constant 0 : i32
    %c0_i32_0 = arith.constant 0 : i32
    %c0_i32_1 = arith.constant 0 : i32
    return %c0_i32, %c0_i32_0 : i32, i32
  }
  func.func @transform_4(%arg0: i32) -> (i32, i32) {
    %c0_i32 = arith.constant 0 : i32
    %c0_i32_0 = arith.constant 0 : i32
    %c0_i32_1 = arith.constant 0 : i32
    return %c0_i32, %c0_i32_0 : i32, i32
  }
  func.func @transform_5(%arg0: i32) -> (i32, i32) {
    %c0_i32 = arith.constant 0 : i32
    %c0_i32_0 = arith.constant 0 : i32
    %c0_i32_1 = arith.constant 0 : i32
    return %c0_i32, %c0_i32_0 : i32, i32
  }
  func.func @transform_6(%arg0: i32) -> (i32, i32) {
    %c0_i32 = arith.constant 0 : i32
    %c0_i32_0 = arith.constant 0 : i32
    return %arg0, %c0_i32 : i32, i32
  }
}

</mosaic_0001>

<bundles_post_ra>
// kernel: tpu_custom_call.1
= control target key start
LH: loop header
LB: loop body
LE: loop exit
PB: predicated region body
PF: predicated region fallthrough
CT: control target
= control target key end

     0   :  { %11 = vsyncpa [#allocation3], 0  ;;  %s1219_s0 = inlined_call_operand.hbm [shape: f32[16,36], index: 0, kind: input, shape index: {}]   ;;  %s1220_s1 = inlined_call_operand.hbm [shape: f32[36,256], index: 1, kind: input, shape index: {}]   ;;  %s1221_s2 = inlined_call_operand.hbm [shape: f32[3,256], index: 2, kind: input, shape index: {}]   ;;  %s1222_s3 = inlined_call_operand.hbm [shape: f32[128,128], index: 3, kind: input, shape index: {}]   ;;  %s1223_s4 = inlined_call_operand.hbm [shape: f32[4,128], index: 4, kind: input, shape index: {}]   ;;  %s1224_s5 = inlined_call_operand.hbm [shape: f32[128,128], index: 5, kind: input, shape index: {}]   ;;  %s1225_s6 = inlined_call_operand.vmem [shape: f32[16,1], index: 6, kind: output, shape index: {}]  }
   0x1   :  { %13 = vsyncpa [#allocation3 + $0x1], 0 }
   0x2   :  { %14 = vsyncpa [#allocation5], 0 }
   0x3   :  { %15 = vsyncpa [#allocation8], 0 }
   0x4   :  { %16 = vsyncpa [#allocation11], 0  ;;  %s1067_s21 = smov 0   ;;  %s1069_s22 = smov 0  }
   0x5   :  { %s1071_s23 = smov 0   ;;  %s1073_s24 = smov 0  }
   0x6 LB: > { %s195_s27 = sshll.u32 %s1220_s1, 4  ;;  %s1091_s28 = sadd.s32 4294967295, %s1021_s24   ;;  %s1021_s24 = sphi %s1073_s24, %s1233_s24   ;;  %s1017_s23 = sphi %s1071_s23, %s1232_s23   ;;  %s1013_s22 = sphi %s1069_s22, %s1231_s22   ;;  %s1009_s21 = sphi %s1067_s21, %s1230_s21   ;;  %s196_s27 = int_to_ptr.hbm [resolvable:$true] %s195_s27 }
   0x7   : > { %p668_p0 = scmp.ge.s32.totalorder %s1021_s24, 1  ;;  %p43_p1 = scmp.eq.s32.totalorder %s1091_s28, 0 }
   0x8   : > { %p184_p2 = scmp.lt.s32.totalorder %s1021_s24, 3  ;;  %s1023_s30 = smov [#allocation4]  }
   0x9   : > { %s197_s7 = sshll.u32 %s1023_s30, 4  ;;  %s221_s10 = sshll.u32 %s1222_s3, 4  ;;  %s198_s7 = int_to_ptr.vmem [resolvable:$true] %s197_s7  ;;  %s222_s10 = int_to_ptr.hbm [resolvable:$true] %s221_s10 }
   0xa   : > { %p1096_p3 = pnand %p668_p0, %p184_p2  ;;  %s1024_s12 = smov [#allocation7]  }
   0xb   : > { %s223_s13 = sshll.u32 %s1024_s12, 4  ;;  %s1025_s14 = smov 256   ;;  %s224_s13 = int_to_ptr.vmem [resolvable:$true] %s223_s13 }
   0xc   : > { %p713_p4 = pneg %p1096_p3  ;;  %s1026_s15 = smov 16  }
   0xd   : > { %s1027_s16 = smov 128   ;;  %s1028_s17 = smov 8  }
   0xe   : > { %p1107_p5 = pnand %p713_p4, %p43_p1  ;;  %s210_s20 = sshll.u32 %s1221_s2, 4  ;;  %s211_s20 = int_to_ptr.hbm [resolvable:$true] %s210_s20 }
   0xf   : > { %s1029_s25 = smov [#allocation6]   ;;  %s1131_s18 = sadd.s32 1, %s1021_s24  }
  0x10   : > { %716 = dma.hbm_to_vmem [thread:$0]  (!%p1107_p5), %s196_s27, 1280, %s198_s7, [#allocation5], %s1025_s14, %s1025_s14, %s1026_s15  }
  0x11   : > { %722 = dma.hbm_to_vmem [thread:$0]  (!%p1107_p5), %s222_s10, 2048, %s224_s13, [#allocation8], %s1027_s16, %s1027_s16, %s1028_s17  }
  0x12   : > { %s212_s26 = sshll.u32 %s1029_s25, 4  ;;  %s236_s27 = sshll.u32 %s1223_s4, 4  ;;  %s213_s26 = int_to_ptr.vmem [resolvable:$true] %s212_s26  ;;  %s237_s27 = int_to_ptr.hbm [resolvable:$true] %s236_s27 }
  0x13   : > { %719 = dma.hbm_to_vmem [thread:$0]  (!%p1107_p5), %s211_s20, 128, %s213_s26, [#allocation5]  }
  0x14   : > { %s1030_s7 = smov [#allocation9]   ;;  %s247_s13 = sshll.u32 %s1224_s5, 4  ;;  %s248_s13 = int_to_ptr.hbm [resolvable:$true] %s247_s13 }
  0x15   : > { %s238_s9 = sshll.u32 %s1030_s7, 4  ;;  %s1031_s14 = smov [#allocation10]   ;;  %s239_s9 = int_to_ptr.vmem [resolvable:$true] %s238_s9 }
  0x16   : > { %725 = dma.hbm_to_vmem [thread:$0]  (!%p1107_p5), %s237_s27, 64, %s239_s9, [#allocation8]  }
  0x17   : > { %s249_s15 = sshll.u32 %s1031_s14, 4  ;;  %s26_s19 = ssub.s32 %s1021_s24, %s1131_s18  ;;  %s250_s15 = int_to_ptr.vmem [resolvable:$true] %s249_s15 }
  0x18   : > { %728 = dma.hbm_to_vmem [thread:$0]  (!%p1107_p5), %s248_s13, 2048, %s250_s15, [#allocation11], %s1027_s16, %s1027_s16, %s1028_s17  }
  0x19   : > { %s29_s20 = sadd.s32 1, %s1017_s23  ;;  %p27_p6 = scmp.eq.s32.totalorder %s26_s19, 0 }
  0x1a   : > { %p36_p7 = scmp.ne.s32.totalorder %s1017_s23, %s1013_s22  ;;  %p37_p8 = scmp.eq.s32.totalorder %s1021_s24, 0 }
  0x1b   : > { %p42_p9 = scmp.ne.s32.totalorder %s1013_s22, %s1009_s21  ;;  %p738_p12 = scmp.lt.s32.totalorder %s1021_s24, 2 }
  0x1c   : > { %s1142_s25 = scalar_select %p27_p6, %s1017_s23, %s29_s20  }
  0x1d   : > { %p38_p10 = por %p37_p8, %p36_p7  ;;  %p1146_p11 = por %p43_p1, %p42_p9 }
  0x1e   : > { %s263_s11 = sand.u32 1, %s1017_s23   ;;  %s676_s17 = sshll.u32 %s1021_s24, 3 }
  0x1f   : > { %s675_s16 = sshll.u32 %s263_s11, 3  ;;  %s271_s27 = scalar_lea.hbm %s1219_s0, %s676_s17 }
  0x20   : > { %s267_s7 = scalar_lea.vmem [#allocation2], %s675_s16  ;;  %s273_s10 = sshll.u32 %s271_s27, 4  ;;  %s274_s10 = int_to_ptr.hbm [resolvable:$true] %s273_s10 }
  0x21   : > { %s275_s9 = sshll.u32 %s267_s7, 4  ;;  %p1156_p13 = pnand %p738_p12, %p38_p10  ;;  %s276_s9 = int_to_ptr.vmem [resolvable:$true] %s275_s9 }
  0x22   : > { %s264_s12 = scalar_lea.sflag [#allocation3], %s263_s11  ;;  %s945_s13 = sshra.s32 %s274_s10, 4  ;;  %s946_s13 = int_to_ptr.hbm [resolvable:$true] %s945_s13 }
  0x23   : > { %s947_s14 = scalar_lea.hbm %s946_s13, 8  ;;  %p949_p2 = pneg %p1156_p13 }
  0x24   : > { %p948_p0 = scmp.ne.s32.totalorder %s946_s13, %s947_s14  ;;  %s952_s19 = scalar_lea.hbm %s1219_s0, 16 }
  0x25   : > { %p953_p6 = scmp.lt.s32.totalorder %s946_s13, %s1219_s0  ;;  %p954_p7 = scmp.lt.s32.totalorder %s952_s19, %s947_s14 }
  0x26   : > { %p950_p4 = pnand %p949_p2, %p948_p0 }
  0x27   : > { %p955_p8 = por %p954_p7, %p953_p6 }
  0x28   : > { %p951_p5 = pneg %p950_p4 }
  0x2a   : > { %p956_p9 = pnand %p955_p8, %p951_p5 }
  0x2c   : > { %959 = shalt.err (!%p956_p9)
}
  0x2d   : > { %732 = dma.hbm_to_vmem [thread:$0]  (!%p1156_p13), %s274_s10, 128, %s276_s9, %s264_s12  }
  0x2e   : > { %284 = sbr.rel (%p1096_p3) target bundleno = 779 (0x30b), region = 44  ;;  %s286_s11 = sand.u32 (!%p1096_p3), 1, %s1013_s22  }
  0x2f   : > { %s678_s17 = sshll.u32 (!%p1096_p3), %s286_s11, 3  ;;  %s287_s30 = scalar_lea.sflag (!%p1096_p3), [#allocation3], %s286_s11 }
  0x30   : > { %s290_s8 = scalar_lea.vmem (!%p1096_p3), [#allocation2], %s678_s17 }
  0x33   : > { %992 = dma.done.wait (%p1146_p11), %s287_s30, 128  }
  0x34   : > { %994 = vsyncadd (%p1146_p11), %s287_s30, 4294967168 }
  0x35   : > { %996 = dma.done.wait (%p43_p1), [#allocation5], 1408  }
  0x36   : > { %998 = vsyncadd (%p43_p1), [#allocation5], 4294965888 }
  0x37   : > { %1000 = dma.done.wait (%p43_p1), [#allocation8], 2112  }
  0x38   : > { %1002 = vsyncadd (%p43_p1), [#allocation8], 4294965184 }
  0x39   : > { %1004 = dma.done.wait (%p43_p1), [#allocation11], 2048  }
  0x3a   : > { %1006 = vsyncadd (%p43_p1), [#allocation11], 4294965248  ;;  %vm369_vm0 = vcmask 1043456   ;;  %v357_v0 = vld [vmem:[#allocation4 + $0x40] sm:$0xf]  ;;  %v355_v1 = vld [vmem:[#allocation4 + $0x30] sm:$0xff] }
  0x3b   : > { %685 = vmatpush.msk.msra.mxu0 %vm369_vm0, %v357_v0  ;;  %v353_v2 = vld [vmem:[#allocation4 + $0x20] sm:$0xff]  ;;  %v351_v3 = vld [vmem:[#allocation4 + $0x10] sm:$0xff]  ;;  %vm365_vm1 = vcmask 293888   ;;  %v459_v12 = vld [vmem:[#allocation7 + $0x70] sm:$0xff]  ;;  %p344_p1 = scmp.lt.s32.totalorder %s1091_s28, 1  ;;  %vm552_vm8 = vcmask 7168  }
  0x3c   : > { %v349_v4 = vld [vmem:[#allocation4] sm:$0xff]  ;;  %v1190_v5 = vld [vmem:[%s290_s8] sm:$0xff]  ;;  %v455_v16 = vld [vmem:[#allocation7 + $0x50] sm:$0xff] }
  0x3d   : > { %388 = vmatpush.msra.mxu0 %v355_v1  ;;  %v1194_v6 = vld [vmem:[#allocation6] ss:$4 sm:$0x3]  ;;  %v458_v13 = vld [vmem:[#allocation7 + $0x68] sm:$0xff]  ;;  %v457_v14 = vld [vmem:[#allocation7 + $0x60] sm:$0xff]  ;;  %s1235_s28 = smov (!%p344_p1, %s1091_s28), 1 }
  0x3e   : > { %v361_v7 = vperm.slane %v1194_v6, 0  ;;  %v460_v11 = vld [vmem:[#allocation7 + $0x78] sm:$0xff]  ;;  %v454_v17 = vld [vmem:[#allocation7 + $0x48] sm:$0xff]  ;;  %v453_v18 = vld [vmem:[#allocation7 + $0x40] sm:$0xff]  ;;  %s684_s29 = sshll.u32 %s1235_s28, 3 }
  0x3f   : > { %389 = vmatpush.msra.mxu0 %v353_v2  ;;  %463 = vmatpush.msra.mxu2 %v460_v11  ;;  %v456_v15 = vld [vmem:[#allocation7 + $0x58] sm:$0xff]  ;;  %v451_v20 = vld [vmem:[#allocation7 + $0x30] sm:$0xff]  ;;  %v450_v21 = vld [vmem:[#allocation7 + $0x28] sm:$0xff]  ;;  %s347_s7 = scalar_lea.vmem %s1225_s6, %s684_s29 }
  0x40   : > { %v452_v19 = vld [vmem:[#allocation7 + $0x38] sm:$0xff]  ;;  %v449_v22 = vld [vmem:[#allocation7 + $0x20] sm:$0xff]  ;;  %v447_v25 = vld [vmem:[#allocation7 + $0x10] sm:$0xff] }
  0x41   : > { %390 = vmatpush.msra.mxu0 %v351_v3  ;;  %464 = vmatpush.msra.mxu2 %v459_v12  ;;  %v448_v23 = vld [vmem:[#allocation7 + $0x18] sm:$0xff]  ;;  %v446_v26 = vld [vmem:[#allocation7 + $0x8] sm:$0xff]  ;;  %v445_v28 = vld [vmem:[#allocation7] sm:$0xff] }
  0x42   : > { %v785_v41 = vld [vmem:[#allocation6 + $0x1] ss:$0 sm:$0xff]  ;;  %v786_v44 = vld [vmem:[#allocation6 + $0x2] ss:$0 sm:$0xff]  ;;  %v358_v48 = vld [vmem:[#allocation4 + $0x48] sm:$0xf] }
  0x43   : > { %391 = vmatpush.msra.mxu0 %v349_v4  ;;  %465 = vmatpush.msra.mxu2 %v458_v13  ;;  %v356_v49 = vld [vmem:[#allocation4 + $0x38] sm:$0xff]  ;;  %v354_v50 = vld [vmem:[#allocation4 + $0x28] sm:$0xff] }
  0x44   : > { %686 = vmatmul.msk.f32.vlgmr.msra.gmra.mxu0 %vm365_vm1, %v1190_v5  ;;  %687 = vmatpush.msk.msra.mxu1 %vm369_vm0, %v358_v48  ;;  %v352_v51 = vld [vmem:[#allocation4 + $0x18] sm:$0xff]  ;;  %v350_v52 = vld [vmem:[#allocation4 + $0x8] sm:$0xff] }
  0x45   : > { %466 = vmatpush.msra.mxu2 %v457_v14  ;;  %v787_v53 = vld [vmem:[#allocation9] ss:$0 sm:$0xff]  ;;  %v527_v58 = vld [vmem:[#allocation10 + $0x70] sm:$0xff]  ;;  %v526_v59 = vld [vmem:[#allocation10 + $0x68] sm:$0xff] }
  0x46   : > { %408 = vmatpush.msra.mxu1 %v356_v49  ;;  %v528_v57 = vld [vmem:[#allocation10 + $0x78] sm:$0xff]  ;;  %v525_v60 = vld [vmem:[#allocation10 + $0x60] sm:$0xff]  ;;  %v523_v62 = vld [vmem:[#allocation10 + $0x50] sm:$0xff] }
  0x47   : > { %467 = vmatpush.msra.mxu2 %v456_v15  ;;  %529 = vmatpush.msra.mxu3 %v528_v57  ;;  %v524_v61 = vld [vmem:[#allocation10 + $0x58] sm:$0xff]  ;;  %v522_v63 = vld [vmem:[#allocation10 + $0x48] sm:$0xff]  ;;  %v521_v0 = vld [vmem:[#allocation10 + $0x40] sm:$0xff] }
  0x48   : > { %409 = vmatpush.msra.mxu1 %v354_v50  ;;  %v520_v1 = vld [vmem:[#allocation10 + $0x38] sm:$0xff]  ;;  %v519_v2 = vld [vmem:[#allocation10 + $0x30] sm:$0xff]  ;;  %v518_v3 = vld [vmem:[#allocation10 + $0x28] sm:$0xff] }
  0x49   : > { %468 = vmatpush.msra.mxu2 %v455_v16  ;;  %530 = vmatpush.msra.mxu3 %v527_v58  ;;  %v517_v4 = vld [vmem:[#allocation10 + $0x20] sm:$0xff] }
  0x4a   : > { %410 = vmatpush.msra.mxu1 %v352_v51  ;;  %v513_v11 = vld [vmem:[#allocation10] sm:$0xff] }
  0x4b   : > { %469 = vmatpush.msra.mxu2 %v454_v17  ;;  %531 = vmatpush.msra.mxu3 %v526_v59 }
  0x4c   : > { %411 = vmatpush.msra.mxu1 %v350_v52 }
  0x4d   : > { %470 = vmatpush.msra.mxu2 %v453_v18  ;;  %688 = vmatmul.msk.f32.vlgmr.msra.gmra.mxu1 %vm365_vm1, %v1190_v5 }
  0x4e   : > { %532 = vmatpush.msra.mxu3 %v525_v60 }
  0x4f   : > { %471 = vmatpush.msra.mxu2 %v452_v19 }
  0x50   : > { %533 = vmatpush.msra.mxu3 %v524_v61 }
  0x51   : > { %472 = vmatpush.msra.mxu2 %v451_v20 }
  0x52   : > { %534 = vmatpush.msra.mxu3 %v523_v62 }
  0x53   : > { %473 = vmatpush.msra.mxu2 %v450_v21 }
  0x54   : > { %535 = vmatpush.msra.mxu3 %v522_v63 }
  0x55   : > { %474 = vmatpush.msra.mxu2 %v449_v22 }
  0x56   : > { %536 = vmatpush.msra.mxu3 %v521_v0 }
  0x57   : > { %475 = vmatpush.msra.mxu2 %v448_v23 }
  0x58   : > { %537 = vmatpush.msra.mxu3 %v520_v1 }
  0x59   : > { %476 = vmatpush.msra.mxu2 %v447_v25  ;;  %v788_v25 = vld [vmem:[#allocation9 + $0x1] ss:$0 sm:$0xff] }
  0x5a   : > { %538 = vmatpush.msra.mxu3 %v519_v2 }
  0x5b   : > { %477 = vmatpush.msra.mxu2 %v446_v26 }
  0x5c   : > { %539 = vmatpush.msra.mxu3 %v518_v3 }
  0x5d   : > { %478 = vmatpush.msra.mxu2 %v445_v28 }
  0x5e   : > { %540 = vmatpush.msra.mxu3 %v517_v4 }
  0xc1   : > { %v393_v8 = vpop.f32.mrf.mxu0 }
  0xc2   : > { %v394_v9 = vadd.f32 %v393_v8, %v361_v7  ;;  %v516_v7 = vld [vmem:[#allocation10 + $0x18] sm:$0xff]  ;;  %v515_v8 = vld [vmem:[#allocation10 + $0x10] sm:$0xff] }
  0xc3   : > { %541 = vmatpush.msra.mxu3 %v516_v7 }
  0xc4   : > { %418 = vadd.xlane.f32.xlu0 %v394_v9  ;;  %v420_v10 = vmul.f32 %v394_v9, %v394_v9 }
  0xc5   : > { %542 = vmatpush.msra.mxu3 %v515_v8 }
  0xca   : > { %v413_v26 = vpop.f32.mrf.mxu1 }
  0xcc   : > { %421 = vadd.xlane.f32.xlu0 %v420_v10  ;;  %v514_v10 = vld [vmem:[#allocation10 + $0x8] sm:$0xff] }
  0xcd   : > { %543 = vmatpush.msra.mxu3 %v514_v10 }
  0xcf   : > { %544 = vmatpush.msra.mxu3 %v513_v11 }
 0x137   : > { %v419_v24 = vpop.xlane.xlu0 %418 }
 0x138   : > { %v423_v27 = vmul.f32 0.015625, %v419_v24  ;;  %v362_v24 = vperm.slane %v1194_v6, 1 }
 0x13a   : > { %v425_v30 = vmul.f32 %v423_v27, %v423_v27  ;;  %v427_v40 = vsub.f32 %v394_v9, %v423_v27 }
 0x13f   : > { %v422_v29 = vpop.xlane.xlu0 %421 }
 0x140   : > { %v424_v31 = vmul.f32 0.015625, %v422_v29  ;;  %v789_v29 = vld [vmem:[#allocation9 + $0x2] ss:$0 sm:$0xff] }
 0x142   : > { %v426_v32 = vsub.f32 %v424_v31, %v425_v30  ;;  %v414_v30 = vadd.f32 %v413_v26, %v362_v24 }
 0x144   : > { %v428_v33 = vadd.f32 1e-05, %v426_v32 }
 0x146   : > { %791 = vrsqrt.f32 %v428_v33  ;;  %vm435_vm3 = vweird.f32 %v428_v33 }
 0x14c   : > { %v792_v34 = vpop.eup %791 }
 0x14d   : > { %v430_v35 = vmul.f32 %v792_v34, %v428_v33  ;;  %vm436_vm2 = vweird.f32 %v792_v34 }
 0x14e   : > { %vm437_vm4 = vmor %vm435_vm3, %vm436_vm2 }
 0x14f   : > { %v431_v36 = vmul.f32 %v792_v34, %v430_v35  ;;  %v790_v35 = vld [vmem:[#allocation9 + $0x3] ss:$0 sm:$0xff] }
 0x151   : > { %v432_v37 = vmul.f32 0.5, %v431_v36 }
 0x153   : > { %v433_v38 = vsub.f32 1.5, %v432_v37 }
 0x155   : > { %v434_v39 = vmul.f32 %v792_v34, %v433_v38 }
 0x157   : > { %v438_v42 = vsel %vm437_vm4, %v792_v34, %v434_v39 }
 0x158   : > { %v439_v43 = vmul.f32 %v438_v42, %v427_v40 }
 0x15a   : > { %v441_v45 = vmul.f32 %v785_v41, %v439_v43 }
 0x15c   : > { %v443_v46 = vadd.f32 %v786_v44, %v441_v45 }
 0x15e   : > { %v444_v47 = vmax.f32 %v443_v46, 0.0 }
 0x160   : > { %479 = vmatmul.f32.vlgmr.msra.gmra.mxu2 %v444_v47 }
 0x1e3   : > { %v480_v54 = vpop.f32.mrf.mxu2 }
 0x1e4   : > { %v481_v55 = vadd.f32 %v787_v53, %v480_v54 }
 0x1e6   : > { %485 = vadd.xlane.f32.xlu1 %v481_v55  ;;  %v487_v56 = vmul.f32 %v481_v55, %v481_v55 }
 0x1ee   : > { %488 = vadd.xlane.f32.xlu1 %v487_v56 }
 0x259   : > { %v486_v5 = vpop.xlane.xlu1 %485 }
 0x25a   : > { %v490_v9 = vmul.f32 0.015625, %v486_v5 }
 0x25c   : > { %v492_v13 = vmul.f32 %v490_v9, %v490_v9  ;;  %v494_v23 = vsub.f32 %v481_v55, %v490_v9 }
 0x261   : > { %v489_v12 = vpop.xlane.xlu1 %488 }
 0x262   : > { %v491_v14 = vmul.f32 0.015625, %v489_v12 }
 0x264   : > { %v493_v15 = vsub.f32 %v491_v14, %v492_v13 }
 0x266   : > { %v495_v16 = vadd.f32 1e-05, %v493_v15 }
 0x268   : > { %793 = vrsqrt.f32 %v495_v16  ;;  %vm502_vm6 = vweird.f32 %v495_v16 }
 0x26e   : > { %v794_v17 = vpop.eup %793 }
 0x26f   : > { %v497_v18 = vmul.f32 %v794_v17, %v495_v16  ;;  %vm503_vm5 = vweird.f32 %v794_v17 }
 0x270   : > { %vm504_vm7 = vmor %vm502_vm6, %vm503_vm5 }
 0x271   : > { %v498_v19 = vmul.f32 %v794_v17, %v497_v18 }
 0x273   : > { %v499_v20 = vmul.f32 0.5, %v498_v19 }
 0x275   : > { %v500_v21 = vsub.f32 1.5, %v499_v20 }
 0x277   : > { %v501_v22 = vmul.f32 %v794_v17, %v500_v21 }
 0x279   : > { %v505_v27 = vsel %vm504_vm7, %v794_v17, %v501_v22 }
 0x27a   : > { %v506_v28 = vmul.f32 %v505_v27, %v494_v23 }
 0x27c   : > { %v508_v31 = vmul.f32 %v788_v25, %v506_v28 }
 0x27e   : > { %v510_v32 = vadd.f32 %v789_v29, %v508_v31 }
 0x280   : > { %v511_v33 = vadd.f32 %v510_v32, %v414_v30 }
 0x282   : > { %v512_v34 = vmax.f32 %v511_v33, 0.0 }
 0x284   : > { %545 = vmatmul.f32.vlgmr.msra.gmra.mxu3 %v512_v34 }
 0x307   : > { %v546_v6 = vpop.f32.mrf.mxu3 }
 0x308   : > { %v551_v36 = vadd.f32 %v790_v35, %v546_v6 }
 0x30a   : > { %553 = vst.msk [vmem:[%s347_s7] sm:$0xff] %vm552_vm8, %v551_v36 }
 0x30b PF: > { %p19_p3 = scmp.ge.s32.totalorder %s1131_s18, 4   ;;  %s1230_s21 = smov %s1013_s22 }
 0x30c   : > { %s1231_s22 = smov %s1017_s23  ;;  %s1232_s23 = smov %s1142_s25 }
 0x30d   : > { %s1233_s24 = smov %s1131_s18  ;;  %21 = sbr.rel (!%p19_p3) target bundleno = 6 (0x6), region = 104 }
 0x312   :  { %573 = vsyncpa [#allocation3], 1 }
 0x313   :  { %575 = vsyncpa [#allocation3 + $0x1], 1 }
 0x314   :  { %576 = vsyncpa [#allocation5], 1 }
 0x315   :  { %577 = vsyncpa [#allocation8], 1 }
 0x316   :  { %578 = vsyncpa [#allocation11], 1 }

</bundles_post_ra>
